<compile_context>
chip_gen: v7x
topology: tpu7x:2x2x1
jax: 0.10.0
libtpu: 0.0.40
codegen_flags: <defaults>
</compile_context>

<pallas_src>
import functools

import jax
import jax.numpy as jnp
from jax.experimental import pallas as pl
from jax.experimental.pallas import tpu as pltpu


def _round_up(x, m):
    return ((x + m - 1) // m) * m


def _pick_tile(total, target, align):
    """Largest divisor of `total` that is <= target and a multiple of `align`;
    falls back to `total` (a full-extent block is always legal)."""
    if total <= target:
        return total
    for t in range(min(target, total), 0, -1):
        if total % t == 0 and t % align == 0:
            return t
    return total


def _encoder_kernel(drop_rate, x_ref, w_ref, b_ref, r_ref, o_ref, acc_ref):
    """x_ref  : (tile_n, tile_hw, C)  stream dtype  NHWC-flattened features
       w_ref  : (D_pad, C)            f32           fc weight (1/HW folded in)
       b_ref  : (1, D_pad)            f32           fc bias (padded)
       r_ref  : (tile_n, D_pad)       int32         dropout bits in [0, 2^24)
       o_ref  : (tile_n, D_pad)       f32           output block
       acc_ref: (tile_n, C)           f32 VMEM      pooled-sum accumulator
    """
    k = pl.program_id(1)

    @pl.when(k == 0)
    def _():
        acc_ref[...] = jnp.zeros_like(acc_ref)

    # Partial spatial sum for this tile: sublane-axis reduction, C on lanes.
    acc_ref[...] += jnp.sum(x_ref[...].astype(jnp.float32), axis=1)

    @pl.when(k == pl.num_programs(1) - 1)
    def _():
        pooled = acc_ref[...]                      # (tile_n, C); 1/HW is in w
        # fc: contract C against the weight's last axis (weight kept in
        # PyTorch (out_features, in_features) layout -> no transpose needed).
        y = jax.lax.dot_general(
            pooled, w_ref[...],
            dimension_numbers=(((1,), (1,)), ((), ())),
            preferred_element_type=jnp.float32)    # (tile_n, D_pad)
        y = y + b_ref[...]
        y = jnp.maximum(y, 0.0)                    # ReLU
        if drop_rate > 0.0:                        # inverted dropout
            thresh = jnp.int32(int(round(drop_rate * (1 << 24))))
            keep = r_ref[...] >= thresh
            y = jnp.where(keep, y * (1.0 / (1.0 - drop_rate)), 0.0)
        o_ref[...] = y.astype(o_ref.dtype)


def encoder_forward(x_nchw, w_fc, b_fc, *, drop_rate, seed,
                    stream_dtype=jnp.bfloat16,
                    tile_n_target=8, tile_hw_target=128):
    """x_nchw: (N, C, H, W) f32
       w_fc:   (dim, C) f32  (PyTorch Linear layout: (out_features, in_features))
       b_fc:   (dim,)   f32
       returns (N, 1, dim) f32  -- matches x.view(batch_size, -1, dim)
    """
    N, C, H, W = x_nchw.shape
    D = w_fc.shape[0]
    HW = H * W

    N_pad = _round_up(N, 8)
    D_pad = _round_up(D, 128)
    tile_n = _pick_tile(N_pad, tile_n_target, 8)
    tile_hw = _pick_tile(HW, tile_hw_target, 8)

    # NCHW -> (N, HW, C): pooling reduces over sublanes, C stays lane-dense.
    x = jnp.transpose(x_nchw, (0, 2, 3, 1)).reshape(N, HW, C)
    x = x.astype(stream_dtype)
    if N_pad != N:
        x = jnp.pad(x, ((0, N_pad - N), (0, 0), (0, 0)))

    # Fold the 1/HW pooling scale into the fc weight; pad out_features to a
    # lane-dense multiple of 128.  (In a real model, do this once at init.)
    w = w_fc.astype(jnp.float32) * jnp.float32(1.0 / HW)       # (D, C)
    b = b_fc.astype(jnp.float32)
    if D_pad != D:
        w = jnp.pad(w, ((0, D_pad - D), (0, 0)))
        b = jnp.pad(b, ((0, D_pad - D),))
    b = b.reshape(1, D_pad)

    # Dropout random bits in [0, 2^24), one per (padded) output element.
    rbits = jax.random.randint(jax.random.PRNGKey(seed), (N_pad, D_pad),
                               0, 1 << 24, dtype=jnp.int32)

    grid = (N_pad // tile_n, HW // tile_hw)

    # Scoped-VMEM budget sized to the chosen tiles (with headroom), capped at
    # v7x's 64 MiB physical VMEM.
    xi = jnp.dtype(stream_dtype).itemsize
    est = (2 * tile_n * tile_hw * C * xi          # x (double-buffered)
           + 2 * tile_n * D_pad * 4               # dropout bits
           + 2 * (D_pad * C * 4 + D_pad * 4)      # weight + bias
           + 2 * tile_n * D_pad * 4               # output block
           + tile_n * C * 4)                      # accumulator scratch
    vmem_limit = int(min(max(4 * est, 32 * 1024 * 1024), 64 * 1024 * 1024))

    grid_spec = pltpu.PrefetchScalarGridSpec(
        num_scalar_prefetch=0,
        grid=grid,
        in_specs=[
            pl.BlockSpec((tile_n, tile_hw, C), lambda i, k: (i, k, 0)),
            pl.BlockSpec((D_pad, C), lambda i, k: (0, 0)),
            pl.BlockSpec((1, D_pad), lambda i, k: (0, 0)),
            pl.BlockSpec((tile_n, D_pad), lambda i, k: (i, 0)),
        ],
        out_specs=pl.BlockSpec((tile_n, D_pad), lambda i, k: (i, 0)),
        scratch_shapes=[pltpu.VMEM((tile_n, C), jnp.float32)],
    )

    out_pad = pl.pallas_call(
        functools.partial(_encoder_kernel, float(drop_rate)),
        out_shape=jax.ShapeDtypeStruct((N_pad, D_pad), jnp.float32),
        grid_spec=grid_spec,
        compiler_params=pltpu.CompilerParams(
            dimension_semantics=("parallel", "arbitrary"),
            vmem_limit_bytes=vmem_limit),
    )(x, w, b, rbits)

    # x.view(batch_size, -1, dim)
    return out_pad[:N, :D].reshape(N, -1, D)


if __name__ == "__main__":
    # Small synthetic shapes consistent with the module's forward:
    #   images: (batch=2, channels=4, 16, 16), dim=32, drop_rate=0.1
    N, C, H, W = 2, 4, 16, 16
    DIM = 32
    DROP_RATE = 0.1

    key = jax.random.PRNGKey(0)
    kx, kw, kb = jax.random.split(key, 3)

    x = jax.random.normal(kx, (N, C, H, W), dtype=jnp.float32)
    # Deterministic init of the replaced fc layer (PyTorch Linear shapes).
    w_fc = jax.random.normal(kw, (DIM, C), dtype=jnp.float32) * 0.1
    b_fc = jax.random.normal(kb, (DIM,), dtype=jnp.float32) * 0.01

    out = encoder_forward(x, w_fc, b_fc, drop_rate=DROP_RATE, seed=1234)
    out = jax.block_until_ready(out)

    assert out.shape == (N, 1, DIM), out.shape
    assert out.dtype == jnp.float32
    print("KERNEL_OK")
</pallas_src>

<mosaic_0001>
module attributes {stable_mosaic.version = 11 : i64} {
  func.func @_encoder_kernel(%arg0: i32, %arg1: i32, %arg2: memref<8x128x4xbf16, #tpu.memory_space<vmem>>, %arg3: memref<128x4xf32, #tpu.memory_space<vmem>>, %arg4: memref<1x128xf32, #tpu.memory_space<vmem>>, %arg5: memref<8x128xi32, #tpu.memory_space<vmem>>, %arg6: memref<8x128xf32, #tpu.memory_space<vmem>>, %arg7: memref<8x4xf32, #tpu.memory_space<vmem>>) attributes {dimension_semantics = [#tpu.dimension_semantics<parallel>, #tpu.dimension_semantics<arbitrary>], iteration_bounds = array<i64: 1, 2>, scalar_prefetch = 0 : i64, scratch_operands = 1 : i64, tpu.core_type = #tpu.core_type<tc>, window_params = [{transform_indices = @transform_0, window_bounds = array<i64: 8, 128, 4>}, {pipeline_mode = #tpu.pipeline_mode<synchronous>, transform_indices = @transform_1, window_bounds = array<i64: 128, 4>}, {pipeline_mode = #tpu.pipeline_mode<synchronous>, transform_indices = @transform_2, window_bounds = array<i64: 1, 128>}, {transform_indices = @transform_3, window_bounds = array<i64: 8, 128>}, {transform_indices = @transform_4, window_bounds = array<i64: 8, 128>}]} {
    %c0_i32 = arith.constant 0 : i32
    %0 = arith.cmpi eq, %arg1, %c0_i32 : i32
    %1 = arith.extui %0 : i1 to i32
    %c0_i32_0 = arith.constant 0 : i32
    %2 = arith.cmpi ne, %1, %c0_i32_0 : i32
    scf.if %2 {
      %cst_8 = arith.constant 0.000000e+00 : f32
      %12 = vector.broadcast %cst_8 : f32 to vector<8x4xf32>
      %c0_9 = arith.constant 0 : index
      %c0_10 = arith.constant 0 : index
      %13 = vector.load %arg7[%c0_9, %c0_10] : memref<8x4xf32, #tpu.memory_space<vmem>>, vector<8x4xf32>
      tpu.vector_store %arg7[%c0_9, %c0_10], %12 {strides = array<i32>} : memref<8x4xf32, #tpu.memory_space<vmem>>, vector<8x4xf32>,
    } else {
    }
    %c0 = arith.constant 0 : index
    %c0_1 = arith.constant 0 : index
    %3 = vector.load %arg7[%c0, %c0_1] : memref<8x4xf32, #tpu.memory_space<vmem>>, vector<8x4xf32>
    %c0_2 = arith.constant 0 : index
    %c0_3 = arith.constant 0 : index
    %c0_4 = arith.constant 0 : index
    %4 = vector.load %arg2[%c0_2, %c0_3, %c0_4] : memref<8x128x4xbf16, #tpu.memory_space<vmem>>, vector<8x128x4xbf16>
    %5 = arith.extf %4 : vector<8x128x4xbf16> to vector<8x128x4xf32>
    %cst = arith.constant dense<0.000000e+00> : vector<8x4xf32>
    %6 = vector.multi_reduction <add>, %5, %cst [1] : vector<8x128x4xf32> to vector<8x4xf32>
    %7 = arith.addf %3, %6 : vector<8x4xf32>
    %c0_5 = arith.constant 0 : index
    %c0_6 = arith.constant 0 : index
    %8 = vector.load %arg7[%c0_5, %c0_6] : memref<8x4xf32, #tpu.memory_space<vmem>>, vector<8x4xf32>
    tpu.vector_store %arg7[%c0_5, %c0_6], %7 {strides = array<i32>} : memref<8x4xf32, #tpu.memory_space<vmem>>, vector<8x4xf32>,
    %c1_i32 = arith.constant 1 : i32
    %9 = arith.cmpi eq, %arg1, %c1_i32 : i32
    %10 = arith.extui %9 : i1 to i32
    %c0_i32_7 = arith.constant 0 : i32
    %11 = arith.cmpi ne, %10, %c0_i32_7 : i32
    scf.if %11 {
      %c0_8 = arith.constant 0 : index
      %c0_9 = arith.constant 0 : index
      %12 = vector.load %arg7[%c0_8, %c0_9] : memref<8x4xf32, #tpu.memory_space<vmem>>, vector<8x4xf32>
      %c0_10 = arith.constant 0 : index
      %c0_11 = arith.constant 0 : index
      %13 = vector.load %arg3[%c0_10, %c0_11] : memref<128x4xf32, #tpu.memory_space<vmem>>, vector<128x4xf32>
      %cst_12 = arith.constant dense<0.000000e+00> : vector<8x128xf32>
      %14 = tpu.matmul %12, %13, %cst_12 {dimension_numbers = #tpu.dot_dimension_numbers<[1], [1], [0], [0], [0, 0, 1, 0], [], []>} : vector<8x4xf32>, vector<128x4xf32>, vector<8x128xf32> -> vector<8x128xf32>
      %c0_13 = arith.constant 0 : index
      %c0_14 = arith.constant 0 : index
      %15 = vector.load %arg4[%c0_13, %c0_14] : memref<1x128xf32, #tpu.memory_space<vmem>>, vector<1x128xf32>
      %16 = vector.broadcast %15 : vector<1x128xf32> to vector<8x128xf32>
      %17 = arith.addf %14, %16 : vector<8x128xf32>
      %cst_15 = arith.constant 0.000000e+00 : f32
      %18 = vector.broadcast %cst_15 : f32 to vector<8x128xf32>
      %19 = arith.maximumf %17, %18 : vector<8x128xf32>
      %c0_16 = arith.constant 0 : index
      %c0_17 = arith.constant 0 : index
      %20 = vector.load %arg5[%c0_16, %c0_17] : memref<8x128xi32, #tpu.memory_space<vmem>>, vector<8x128xi32>
      %c1677722_i32 = arith.constant 1677722 : i32
      %21 = vector.broadcast %c1677722_i32 : i32 to vector<8x128xi32>
      %22 = arith.cmpi sge, %20, %21 : vector<8x128xi32>
      %cst_18 = arith.constant 1.11111116 : f32
      %23 = vector.broadcast %cst_18 : f32 to vector<8x128xf32>
      %24 = arith.mulf %19, %23 : vector<8x128xf32>
      %cst_19 = arith.constant 0.000000e+00 : f32
      %25 = vector.broadcast %cst_19 : f32 to vector<8x128xf32>
      %26 = arith.select %22, %24, %25 : vector<8x128xi1>, vector<8x128xf32>
      %c0_20 = arith.constant 0 : index
      %c0_21 = arith.constant 0 : index
      %27 = vector.load %arg6[%c0_20, %c0_21] : memref<8x128xf32, #tpu.memory_space<vmem>>, vector<8x128xf32>
      tpu.vector_store %arg6[%c0_20, %c0_21], %26 {strides = array<i32>} : memref<8x128xf32, #tpu.memory_space<vmem>>, vector<8x128xf32>,
    } else {
    }
    return
  }
  func.func @transform_0(%arg0: i32, %arg1: i32) -> (i32, i32, i32) {
    %c0_i32 = arith.constant 0 : i32
    %c0_i32_0 = arith.constant 0 : i32
    return %arg0, %arg1, %c0_i32 : i32, i32, i32
  }
  func.func @transform_1(%arg0: i32, %arg1: i32) -> (i32, i32) {
    %c0_i32 = arith.constant 0 : i32
    %c0_i32_0 = arith.constant 0 : i32
    %c0_i32_1 = arith.constant 0 : i32
    return %c0_i32, %c0_i32_0 : i32, i32
  }
  func.func @transform_2(%arg0: i32, %arg1: i32) -> (i32, i32) {
    %c0_i32 = arith.constant 0 : i32
    %c0_i32_0 = arith.constant 0 : i32
    %c0_i32_1 = arith.constant 0 : i32
    return %c0_i32, %c0_i32_0 : i32, i32
  }
  func.func @transform_3(%arg0: i32, %arg1: i32) -> (i32, i32) {
    %c0_i32 = arith.constant 0 : i32
    %c0_i32_0 = arith.constant 0 : i32
    return %arg0, %c0_i32 : i32, i32
  }
  func.func @transform_4(%arg0: i32, %arg1: i32) -> (i32, i32) {
    %c0_i32 = arith.constant 0 : i32
    %c0_i32_0 = arith.constant 0 : i32
    return %arg0, %c0_i32 : i32, i32
  }
}

</mosaic_0001>

<bundles_post_ra>
// kernel: tpu_custom_call.1
= control target key start
LH: loop header
LB: loop body
LE: loop exit
PB: predicated region body
PF: predicated region fallthrough
CT: control target
= control target key end

     0   :  { %9 = vsyncpa [#allocation5], 0  ;;  %s2186_s15 = smov 0   ;;  %s2188_s16 = smov 0   ;;  %s3165_s0 = inlined_call_operand.vmem [shape: bf16[8,256,4], index: 0, kind: input, shape index: {}]   ;;  %s3166_s1 = inlined_call_operand.vmem [shape: f32[128,4], index: 1, kind: input, shape index: {}]   ;;  %s3167_s2 = inlined_call_operand.vmem [shape: f32[1,128], index: 2, kind: input, shape index: {}]   ;;  %s3168_s3 = inlined_call_operand.vmem [shape: s32[8,128], index: 3, kind: input, shape index: {}]   ;;  %s3169_s4 = inlined_call_operand.hbm [shape: f32[8,128], index: 4, kind: output, shape index: {}]  }
   0x1   :  { %s2190_s17 = smov 0   ;;  %s2192_s18 = smov 0  }
   0x2   :  { %s2194_s19 = smov 0  }
   0x3 LB: > { %s1598_s20 = sadd.s32 4294967295, %s2154_s19   ;;  %s24_s21 = sadd.s32 1, %s2150_s18  ;;  %s2154_s19 = sphi %s2194_s19, %s15_s19   ;;  %s2150_s18 = sphi %s2192_s18, %s3302_s18   ;;  %s2146_s17 = sphi %s2190_s17, %s3301_s17   ;;  %s2142_s16 = sphi %s2188_s16, %s3300_s16   ;;  %s2138_s15 = sphi %s2186_s15, %s3299_s15  }
   0x4   : > { %p25_p0 = scmp.ge.s32.totalorder %s24_s21, 2  ;;  %p43_p1 = scmp.ne.s32.totalorder %s2142_s16, %s2138_s15 }
   0x5   : > { %p44_p2 = scmp.eq.s32.totalorder %s2154_s19, 0  ;;  %s36_s23 = sadd.s32 1, %s2142_s16 }
   0x6   : > { %s3304_s21 = smov (%p25_p0, %s24_s21), 0  ;;  %p1601_p5 = scmp.ge.s32.totalorder %s2154_s19, 2 }
   0x7   : > { %p45_p3 = por %p44_p2, %p43_p1  ;;  %s32_s22 = ssub.s32 %s2150_s18, %s3304_s21 }
   0x8   : > { %p34_p4 = scmp.eq.s32.totalorder %s32_s22, 0  ;;  %176 = sbr.rel (%p1601_p5) target bundleno = 51 (0x33), region = 28 }
   0xa   : > { %s2222_s24 = scalar_select %p34_p4, %s2142_s16, %s36_s23  }
   0xf   : > { %179 = sbr.rel (!%p45_p3) target bundleno = 51 (0x33), region = 32  ;;  %s181_s25 = sand.u32 (%p45_p3), 1, %s2142_s16  }
  0x10   : > { %s1631_s26 = sshll.u32 (%p45_p3), %s2150_s18, 6  ;;  %s1602_s27 = sshll.u32 (%p45_p3), %s181_s25, 9 }
  0x11   : > { %s2230_s30 = scalar_lea.vmem (%p45_p3), %s3165_s0, %s1631_s26  ;;  %s2235_s5 = scalar_lea.vmem (%p45_p3), [#allocation3], %s1602_s27 }
  0x12   : > { %v205_v0 = vld [vmem:[%s2230_s30] sm:$0xff] (%p45_p3)   ;;  %v209_v1 = vld [vmem:[%s2230_s30 + $0x8] sm:$0xff] (%p45_p3)   ;;  %v213_v2 = vld [vmem:[%s2230_s30 + $0x10] sm:$0xff] (%p45_p3)  }
  0x13   : > { %206 = vst [vmem:[%s2235_s5] sm:$0xff] (%p45_p3), %v205_v0   ;;  %210 = vst [vmem:[%s2235_s5 + $0x8] sm:$0xff] (%p45_p3), %v209_v1   ;;  %v217_v3 = vld [vmem:[%s2230_s30 + $0x18] sm:$0xff] (%p45_p3)   ;;  %v221_v4 = vld [vmem:[%s2230_s30 + $0x20] sm:$0xff] (%p45_p3)  }
  0x14   : > { %214 = vst [vmem:[%s2235_s5 + $0x10] sm:$0xff] (%p45_p3), %v213_v2   ;;  %v225_v5 = vld [vmem:[%s2230_s30 + $0x28] sm:$0xff] (%p45_p3)   ;;  %218 = vst [vmem:[%s2235_s5 + $0x18] sm:$0xff] (%p45_p3), %v217_v3   ;;  %v229_v6 = vld [vmem:[%s2230_s30 + $0x30] sm:$0xff] (%p45_p3)  }
  0x15   : > { %222 = vst [vmem:[%s2235_s5 + $0x20] sm:$0xff] (%p45_p3), %v221_v4   ;;  %226 = vst [vmem:[%s2235_s5 + $0x28] sm:$0xff] (%p45_p3), %v225_v5   ;;  %v233_v7 = vld [vmem:[%s2230_s30 + $0x38] sm:$0xff] (%p45_p3)   ;;  %v237_v8 = vld [vmem:[%s2230_s30 + $0x80] sm:$0xff] (%p45_p3)  }
  0x16   : > { %230 = vst [vmem:[%s2235_s5 + $0x30] sm:$0xff] %v229_v6   ;;  %234 = vst [vmem:[%s2235_s5 + $0x38] sm:$0xff] %v233_v7   ;;  %v241_v9 = vld [vmem:[%s2230_s30 + $0x88] sm:$0xff]   ;;  %v245_v10 = vld [vmem:[%s2230_s30 + $0x90] sm:$0xff]  }
  0x17   : > { %238 = vst [vmem:[%s2235_s5 + $0x40] sm:$0xff] %v237_v8   ;;  %v249_v11 = vld [vmem:[%s2230_s30 + $0x98] sm:$0xff]   ;;  %242 = vst [vmem:[%s2235_s5 + $0x48] sm:$0xff] %v241_v9   ;;  %v253_v12 = vld [vmem:[%s2230_s30 + $0xa0] sm:$0xff]  }
  0x18   : > { %246 = vst [vmem:[%s2235_s5 + $0x50] sm:$0xff] %v245_v10   ;;  %250 = vst [vmem:[%s2235_s5 + $0x58] sm:$0xff] %v249_v11   ;;  %v257_v13 = vld [vmem:[%s2230_s30 + $0xa8] sm:$0xff]   ;;  %v261_v14 = vld [vmem:[%s2230_s30 + $0xb0] sm:$0xff]  }
  0x19   : > { %254 = vst [vmem:[%s2235_s5 + $0x60] sm:$0xff] %v253_v12   ;;  %258 = vst [vmem:[%s2235_s5 + $0x68] sm:$0xff] %v257_v13   ;;  %v265_v15 = vld [vmem:[%s2230_s30 + $0xb8] sm:$0xff]   ;;  %v269_v16 = vld [vmem:[%s2230_s30 + $0x100] sm:$0xff]  }
  0x1a   : > { %262 = vst [vmem:[%s2235_s5 + $0x70] sm:$0xff] %v261_v14   ;;  %v273_v17 = vld [vmem:[%s2230_s30 + $0x108] sm:$0xff]   ;;  %266 = vst [vmem:[%s2235_s5 + $0x78] sm:$0xff] %v265_v15   ;;  %v277_v18 = vld [vmem:[%s2230_s30 + $0x110] sm:$0xff]  }
  0x1b   : > { %270 = vst [vmem:[%s2235_s5 + $0x80] sm:$0xff] %v269_v16   ;;  %274 = vst [vmem:[%s2235_s5 + $0x88] sm:$0xff] %v273_v17   ;;  %v281_v19 = vld [vmem:[%s2230_s30 + $0x118] sm:$0xff]   ;;  %v285_v20 = vld [vmem:[%s2230_s30 + $0x120] sm:$0xff]  }
  0x1c   : > { %278 = vst [vmem:[%s2235_s5 + $0x90] sm:$0xff] %v277_v18   ;;  %282 = vst [vmem:[%s2235_s5 + $0x98] sm:$0xff] %v281_v19   ;;  %v289_v21 = vld [vmem:[%s2230_s30 + $0x128] sm:$0xff]   ;;  %v293_v22 = vld [vmem:[%s2230_s30 + $0x130] sm:$0xff]  }
  0x1d   : > { %286 = vst [vmem:[%s2235_s5 + $0xa0] sm:$0xff] %v285_v20   ;;  %v297_v23 = vld [vmem:[%s2230_s30 + $0x138] sm:$0xff]   ;;  %290 = vst [vmem:[%s2235_s5 + $0xa8] sm:$0xff] %v289_v21   ;;  %v301_v24 = vld [vmem:[%s2230_s30 + $0x180] sm:$0xff]  }
  0x1e   : > { %294 = vst [vmem:[%s2235_s5 + $0xb0] sm:$0xff] %v293_v22   ;;  %298 = vst [vmem:[%s2235_s5 + $0xb8] sm:$0xff] %v297_v23   ;;  %v305_v25 = vld [vmem:[%s2230_s30 + $0x188] sm:$0xff]   ;;  %v309_v26 = vld [vmem:[%s2230_s30 + $0x190] sm:$0xff]  }
  0x1f   : > { %302 = vst [vmem:[%s2235_s5 + $0xc0] sm:$0xff] %v301_v24   ;;  %306 = vst [vmem:[%s2235_s5 + $0xc8] sm:$0xff] %v305_v25   ;;  %v313_v27 = vld [vmem:[%s2230_s30 + $0x198] sm:$0xff]   ;;  %v317_v28 = vld [vmem:[%s2230_s30 + $0x1a0] sm:$0xff]  }
  0x20   : > { %310 = vst [vmem:[%s2235_s5 + $0xd0] sm:$0xff] %v309_v26   ;;  %v321_v29 = vld [vmem:[%s2230_s30 + $0x1a8] sm:$0xff]   ;;  %314 = vst [vmem:[%s2235_s5 + $0xd8] sm:$0xff] %v313_v27   ;;  %v325_v30 = vld [vmem:[%s2230_s30 + $0x1b0] sm:$0xff]  }
  0x21   : > { %318 = vst [vmem:[%s2235_s5 + $0xe0] sm:$0xff] %v317_v28   ;;  %322 = vst [vmem:[%s2235_s5 + $0xe8] sm:$0xff] %v321_v29   ;;  %v329_v31 = vld [vmem:[%s2230_s30 + $0x1b8] sm:$0xff]   ;;  %v333_v32 = vld [vmem:[%s2230_s30 + $0x200] sm:$0xff]  }
  0x22   : > { %326 = vst [vmem:[%s2235_s5 + $0xf0] sm:$0xff] %v325_v30   ;;  %330 = vst [vmem:[%s2235_s5 + $0xf8] sm:$0xff] %v329_v31   ;;  %v337_v33 = vld [vmem:[%s2230_s30 + $0x208] sm:$0xff]   ;;  %v341_v34 = vld [vmem:[%s2230_s30 + $0x210] sm:$0xff]  }
  0x23   : > { %334 = vst [vmem:[%s2235_s5 + $0x100] sm:$0xff] %v333_v32   ;;  %v345_v35 = vld [vmem:[%s2230_s30 + $0x218] sm:$0xff]   ;;  %338 = vst [vmem:[%s2235_s5 + $0x108] sm:$0xff] %v337_v33   ;;  %v349_v36 = vld [vmem:[%s2230_s30 + $0x220] sm:$0xff]  }
  0x24   : > { %342 = vst [vmem:[%s2235_s5 + $0x110] sm:$0xff] %v341_v34   ;;  %346 = vst [vmem:[%s2235_s5 + $0x118] sm:$0xff] %v345_v35   ;;  %v353_v37 = vld [vmem:[%s2230_s30 + $0x228] sm:$0xff]   ;;  %v357_v38 = vld [vmem:[%s2230_s30 + $0x230] sm:$0xff]  }
  0x25   : > { %350 = vst [vmem:[%s2235_s5 + $0x120] sm:$0xff] %v349_v36   ;;  %354 = vst [vmem:[%s2235_s5 + $0x128] sm:$0xff] %v353_v37   ;;  %v361_v39 = vld [vmem:[%s2230_s30 + $0x238] sm:$0xff]   ;;  %v365_v40 = vld [vmem:[%s2230_s30 + $0x280] sm:$0xff]  }
  0x26   : > { %358 = vst [vmem:[%s2235_s5 + $0x130] sm:$0xff] %v357_v38   ;;  %v369_v41 = vld [vmem:[%s2230_s30 + $0x288] sm:$0xff]   ;;  %362 = vst [vmem:[%s2235_s5 + $0x138] sm:$0xff] %v361_v39   ;;  %v373_v42 = vld [vmem:[%s2230_s30 + $0x290] sm:$0xff]  }
  0x27   : > { %366 = vst [vmem:[%s2235_s5 + $0x140] sm:$0xff] %v365_v40   ;;  %370 = vst [vmem:[%s2235_s5 + $0x148] sm:$0xff] %v369_v41   ;;  %v377_v43 = vld [vmem:[%s2230_s30 + $0x298] sm:$0xff]   ;;  %v381_v44 = vld [vmem:[%s2230_s30 + $0x2a0] sm:$0xff]  }
  0x28   : > { %374 = vst [vmem:[%s2235_s5 + $0x150] sm:$0xff] %v373_v42   ;;  %378 = vst [vmem:[%s2235_s5 + $0x158] sm:$0xff] %v377_v43   ;;  %v385_v45 = vld [vmem:[%s2230_s30 + $0x2a8] sm:$0xff]   ;;  %v389_v46 = vld [vmem:[%s2230_s30 + $0x2b0] sm:$0xff]  }
  0x29   : > { %382 = vst [vmem:[%s2235_s5 + $0x160] sm:$0xff] %v381_v44   ;;  %v393_v47 = vld [vmem:[%s2230_s30 + $0x2b8] sm:$0xff]   ;;  %386 = vst [vmem:[%s2235_s5 + $0x168] sm:$0xff] %v385_v45   ;;  %v397_v48 = vld [vmem:[%s2230_s30 + $0x300] sm:$0xff]  }
  0x2a   : > { %390 = vst [vmem:[%s2235_s5 + $0x170] sm:$0xff] %v389_v46   ;;  %394 = vst [vmem:[%s2235_s5 + $0x178] sm:$0xff] %v393_v47   ;;  %v401_v49 = vld [vmem:[%s2230_s30 + $0x308] sm:$0xff]   ;;  %v405_v50 = vld [vmem:[%s2230_s30 + $0x310] sm:$0xff]  }
  0x2b   : > { %398 = vst [vmem:[%s2235_s5 + $0x180] sm:$0xff] %v397_v48   ;;  %402 = vst [vmem:[%s2235_s5 + $0x188] sm:$0xff] %v401_v49   ;;  %v409_v51 = vld [vmem:[%s2230_s30 + $0x318] sm:$0xff]   ;;  %v413_v52 = vld [vmem:[%s2230_s30 + $0x320] sm:$0xff]  }
  0x2c   : > { %406 = vst [vmem:[%s2235_s5 + $0x190] sm:$0xff] %v405_v50   ;;  %v417_v53 = vld [vmem:[%s2230_s30 + $0x328] sm:$0xff]   ;;  %410 = vst [vmem:[%s2235_s5 + $0x198] sm:$0xff] %v409_v51   ;;  %v421_v54 = vld [vmem:[%s2230_s30 + $0x330] sm:$0xff]  }
  0x2d   : > { %414 = vst [vmem:[%s2235_s5 + $0x1a0] sm:$0xff] %v413_v52   ;;  %418 = vst [vmem:[%s2235_s5 + $0x1a8] sm:$0xff] %v417_v53   ;;  %v425_v55 = vld [vmem:[%s2230_s30 + $0x338] sm:$0xff]   ;;  %v429_v56 = vld [vmem:[%s2230_s30 + $0x380] sm:$0xff]  }
  0x2e   : > { %422 = vst [vmem:[%s2235_s5 + $0x1b0] sm:$0xff] %v421_v54   ;;  %426 = vst [vmem:[%s2235_s5 + $0x1b8] sm:$0xff] %v425_v55   ;;  %v433_v57 = vld [vmem:[%s2230_s30 + $0x388] sm:$0xff]   ;;  %v437_v58 = vld [vmem:[%s2230_s30 + $0x390] sm:$0xff]  }
  0x2f   : > { %430 = vst [vmem:[%s2235_s5 + $0x1c0] sm:$0xff] %v429_v56   ;;  %v441_v59 = vld [vmem:[%s2230_s30 + $0x398] sm:$0xff]   ;;  %434 = vst [vmem:[%s2235_s5 + $0x1c8] sm:$0xff] %v433_v57   ;;  %v445_v60 = vld [vmem:[%s2230_s30 + $0x3a0] sm:$0xff]  }
  0x30   : > { %438 = vst [vmem:[%s2235_s5 + $0x1d0] sm:$0xff] %v437_v58   ;;  %442 = vst [vmem:[%s2235_s5 + $0x1d8] sm:$0xff] %v441_v59   ;;  %v449_v61 = vld [vmem:[%s2230_s30 + $0x3a8] sm:$0xff]   ;;  %v453_v62 = vld [vmem:[%s2230_s30 + $0x3b0] sm:$0xff]  }
  0x31   : > { %446 = vst [vmem:[%s2235_s5 + $0x1e0] sm:$0xff] %v445_v60   ;;  %450 = vst [vmem:[%s2235_s5 + $0x1e8] sm:$0xff] %v449_v61   ;;  %v457_v63 = vld [vmem:[%s2230_s30 + $0x3b8] sm:$0xff]  }
  0x32   : > { %454 = vst [vmem:[%s2235_s5 + $0x1f0] sm:$0xff] %v453_v62   ;;  %458 = vst [vmem:[%s2235_s5 + $0x1f8] sm:$0xff] %v457_v63  }
  0x33 PF: > { %p1605_p6 = scmp.ge.s32.totalorder %s2154_s19, 1  ;;  %p738_p7 = scmp.lt.s32.totalorder %s2154_s19, 3 }
  0x35   : > { %p739_p8 = pnand %p1605_p6, %p738_p7 }
  0x37   : > { %742 = sbr.rel (%p739_p8) target bundleno = 488 (0x1e8), region = 73 }
  0x3e   : > { %s745_s6 = sand.u32 1, %s2138_s15   ;;  %p1607_p9 = scmp.ne.s32.totalorder %s2146_s17, 0 }
  0x3f   : > { %s1606_s7 = sshll.u32 %s745_s6, 9  ;;  %vm779_vm0 = vcmask (!%p1607_p9), 31744   ;;  %v2156_v0 = vmov (!%p1607_p9), 0.0  }
  0x40   : > { %s2365_s8 = scalar_lea.vmem [#allocation3], %s1606_s7  ;;  %778 = sbr.rel (%p1607_p9) target bundleno = 71 (0x47), region = 81  ;;  %780 = vst.msk [vmem:[#allocation2] sm:$0xff] (!%p1607_p9), %vm779_vm0, %v2156_v0 }
  0x47 PF: > { %v2369_v1 = vld [vmem:[%s2365_s8] sm:$0xff]   ;;  %v2372_v2 = vld [vmem:[%s2365_s8 + $0x8] sm:$0xff]   ;;  %v2375_v3 = vld [vmem:[%s2365_s8 + $0x10] sm:$0xff]   ;;  %vm1038_vm1 = vcmask 31744   ;;  %vm1343_vm2 = vcmask 1041409   ;;  %vm1345_vm3 = vcmask 1042434  }
  0x48   : > { %v2378_v4 = vld [vmem:[%s2365_s8 + $0x18] sm:$0xff]   ;;  %v2381_v5 = vld [vmem:[%s2365_s8 + $0x20] sm:$0xff]   ;;  %v1634_v6 = vunpack.c.l.bf16 %v2369_v1  ;;  %v1635_v7 = vunpack.c.h.bf16 %v2369_v1  ;;  %v2386_v8 = vld [vmem:[%s2365_s8 + $0x28] sm:$0xff]   ;;  %v1638_v10 = vunpack.c.l.bf16 %v2372_v2  ;;  %v1639_v11 = vunpack.c.h.bf16 %v2372_v2  ;;  %p1608_p10 = scmp.ne.s32.totalorder %s2146_s17, 1 }
  0x49   : > { %v2389_v9 = vld [vmem:[%s2365_s8 + $0x30] sm:$0xff]   ;;  %v1642_v12 = vunpack.c.l.bf16 %v2375_v3  ;;  %v1643_v13 = vunpack.c.h.bf16 %v2375_v3  ;;  %v2396_v14 = vld [vmem:[%s2365_s8 + $0x38] sm:$0xff]   ;;  %v2399_v15 = vld [vmem:[%s2365_s8 + $0x40] sm:$0xff]   ;;  %vm1347_vm4 = vcmask 1043459   ;;  %vm1349_vm5 = vcmask 1044484  }
  0x4a   : > { %v2406_v20 = vld [vmem:[%s2365_s8 + $0x48] sm:$0xff]   ;;  %v2409_v21 = vld [vmem:[%s2365_s8 + $0x50] sm:$0xff]   ;;  %v2416_v26 = vld [vmem:[%s2365_s8 + $0x58] sm:$0xff]   ;;  %v1666_v30 = vunpack.c.l.bf16 %v2399_v15  ;;  %v1667_v31 = vunpack.c.h.bf16 %v2399_v15  ;;  %v1039_v55 = vsel %vm1038_vm1, %v1634_v6, 0.0  ;;  %v1040_v42 = vsel %vm1038_vm1, %v1635_v7, 0.0 }
  0x4b   : > { %v2419_v27 = vld [vmem:[%s2365_s8 + $0x60] sm:$0xff]   ;;  %v2426_v32 = vld [vmem:[%s2365_s8 + $0x68] sm:$0xff]   ;;  %v2429_v33 = vld [vmem:[%s2365_s8 + $0x70] sm:$0xff]   ;;  %v1670_v34 = vunpack.c.l.bf16 %v2406_v20  ;;  %v1042_v61 = vsel %vm1038_vm1, %v1638_v10, 0.0  ;;  %v1041_v36 = vadd.f32 %v1040_v42, %v1039_v55  ;;  %v1044_v10 = vsel %vm1038_vm1, %v1639_v11, 0.0 }
  0x4c   : > { %v2436_v38 = vld [vmem:[%s2365_s8 + $0x78] sm:$0xff]   ;;  %v2439_v39 = vld [vmem:[%s2365_s8 + $0x80] sm:$0xff]   ;;  %v2446_v44 = vld [vmem:[%s2365_s8 + $0x88] sm:$0xff]   ;;  %v1046_v7 = vsel %vm1038_vm1, %v1642_v12, 0.0  ;;  %v1076_v2 = vsel %vm1038_vm1, %v1666_v30, 0.0  ;;  %v1077_v11 = vsel %vm1038_vm1, %v1667_v31, 0.0  ;;  %v3182_v59 = vunpack.c.h.bf16 %v2406_v20 }
  0x4d   : > { %v2449_v45 = vld [vmem:[%s2365_s8 + $0x90] sm:$0xff]   ;;  %v2456_v50 = vld [vmem:[%s2365_s8 + $0x98] sm:$0xff]   ;;  %v2459_v51 = vld [vmem:[%s2365_s8 + $0xa0] sm:$0xff]   ;;  %v1043_v42 = vadd.f32 %v1042_v61, %v1041_v36  ;;  %v1078_v55 = vadd.f32 %v1077_v11, %v1076_v2  ;;  %v1079_v12 = vsel %vm1038_vm1, %v1670_v34, 0.0  ;;  %v1048_v31 = vsel %vm1038_vm1, %v1643_v13, 0.0 }
  0x4e   : > { %v2466_v56 = vld [vmem:[%s2365_s8 + $0xa8] sm:$0xff]   ;;  %v2469_v57 = vld [vmem:[%s2365_s8 + $0xb0] sm:$0xff]   ;;  %v2476_v62 = vld [vmem:[%s2365_s8 + $0xb8] sm:$0xff]   ;;  %v1081_v22 = vsel %vm1038_vm1, %v3182_v59, 0.0  ;;  %v3184_v13 = vunpack.c.l.bf16 %v2409_v21  ;;  %v3187_v3 = vunpack.c.h.bf16 %v2409_v21  ;;  %v3189_v59 = vunpack.c.h.bf16 %v2439_v39 }
  0x4f   : > { %v2479_v63 = vld [vmem:[%s2365_s8 + $0xc0] sm:$0xff]   ;;  %v2486_v48 = vld [vmem:[%s2365_s8 + $0xc8] sm:$0xff]   ;;  %v2489_v47 = vld [vmem:[%s2365_s8 + $0xd0] sm:$0xff]   ;;  %v1045_v61 = vadd.f32 %v1044_v10, %v1043_v42  ;;  %v1080_v11 = vadd.f32 %v1079_v12, %v1078_v55  ;;  %v3185_v55 = vunpack.c.l.bf16 %v2378_v4  ;;  %v3188_v42 = vunpack.c.l.bf16 %v2439_v39 }
  0x50   : > { %v2496_v24 = vld [vmem:[%s2365_s8 + $0xd8] sm:$0xff]   ;;  %v2499_v23 = vld [vmem:[%s2365_s8 + $0xe0] sm:$0xff]   ;;  %v2506_v28 = vld [vmem:[%s2365_s8 + $0xe8] sm:$0xff]   ;;  %v1083_v20 = vsel %vm1038_vm1, %v3184_v13, 0.0  ;;  %v1085_v34 = vsel %vm1038_vm1, %v3187_v3, 0.0  ;;  %v1114_v1 = vsel %vm1038_vm1, %v3189_v59, 0.0 }
  0x51   : > { %v2509_v52 = vld [vmem:[%s2365_s8 + $0xf0] sm:$0xff]   ;;  %v2516_v43 = vld [vmem:[%s2365_s8 + $0xf8] sm:$0xff]   ;;  %v2519_v19 = vld [vmem:[%s2365_s8 + $0x100] sm:$0xff]   ;;  %v1047_v2 = vadd.f32 %v1046_v7, %v1045_v61  ;;  %v1050_v61 = vsel %vm1038_vm1, %v3185_v55, 0.0  ;;  %v1082_v12 = vadd.f32 %v1081_v22, %v1080_v11  ;;  %v1113_v13 = vsel %vm1038_vm1, %v3188_v42, 0.0 }
  0x52   : > { %v2526_v25 = vld [vmem:[%s2365_s8 + $0x108] sm:$0xff]   ;;  %v2529_v46 = vld [vmem:[%s2365_s8 + $0x110] sm:$0xff]   ;;  %v2536_v0 = vld [vmem:[%s2365_s8 + $0x118] sm:$0xff]   ;;  %v1115_v3 = vadd.f32 %v1114_v1, %v1113_v13  ;;  %v3193_v11 = vunpack.c.h.bf16 %v2378_v4  ;;  %v3194_v42 = vunpack.c.l.bf16 %v2416_v26  ;;  %v3197_v13 = vunpack.c.l.bf16 %v2479_v63 }
  0x53   : > { %v2539_v29 = vld [vmem:[%s2365_s8 + $0x120] sm:$0xff]   ;;  %v2546_v60 = vld [vmem:[%s2365_s8 + $0x128] sm:$0xff]   ;;  %v2549_v49 = vld [vmem:[%s2365_s8 + $0x130] sm:$0xff]   ;;  %v1049_v7 = vadd.f32 %v1048_v31, %v1047_v2  ;;  %v3190_v31 = vunpack.c.l.bf16 %v2446_v44  ;;  %v1084_v21 = vadd.f32 %v1083_v20, %v1082_v12  ;;  %v3198_v12 = vunpack.c.h.bf16 %v2479_v63 }
  0x54   : > { %v2556_v17 = vld [vmem:[%s2365_s8 + $0x138] sm:$0xff]   ;;  %v2559_v41 = vld [vmem:[%s2365_s8 + $0x140] sm:$0xff]   ;;  %v2566_v53 = vld [vmem:[%s2365_s8 + $0x148] sm:$0xff]   ;;  %vm1351_vm6 = vcmask 1045509   ;;  %vm1353_vm7 = vcmask 1046534   ;;  %vm1355_vm8 = vcmask 1047559  }
  0x55   : > { %v2573_v54 = vld [vmem:[%s2365_s8 + $0x150] sm:$0xff]   ;;  %v2580_v37 = vld [vmem:[%s2365_s8 + $0x158] sm:$0xff]   ;;  %v2583_v40 = vld [vmem:[%s2365_s8 + $0x160] sm:$0xff]   ;;  %v1116_v2 = vsel %vm1038_vm1, %v3190_v31, 0.0  ;;  %v1051_v59 = vadd.f32 %v1050_v61, %v1049_v7  ;;  %v1086_v1 = vadd.f32 %v1085_v34, %v1084_v21  ;;  %v1087_v7 = vsel %vm1038_vm1, %v3194_v42, 0.0 }
  0x56   : > { %v2587_v58 = vld [vmem:[%s2365_s8 + $0x168] sm:$0xff]   ;;  %v2602_v16 = vld [vmem:[%s2365_s8 + $0x170] sm:$0xff]   ;;  %v2614_v35 = vld [vmem:[%s2365_s8 + $0x178] sm:$0xff]   ;;  %v1117_v20 = vadd.f32 %v1116_v2, %v1115_v3  ;;  %v3196_v34 = vunpack.c.h.bf16 %v2449_v45  ;;  %v1150_v42 = vsel %vm1038_vm1, %v3197_v13, 0.0  ;;  %v3199_v61 = vunpack.c.l.bf16 %v2486_v48 }
  0x57   : > { %3180 = vst [vmem:[#allocation7_spill] sm:$0xff] %v2602_v16  ;;  %3181 = vst [vmem:[#allocation8_spill] sm:$0xff] %v2614_v35  ;;  %v2618_v6 = vld [vmem:[%s2365_s8 + $0x180] sm:$0xff]   ;;  %v2631_v18 = vld [vmem:[%s2365_s8 + $0x188] sm:$0xff]   ;;  %v3192_v16 = vunpack.c.h.bf16 %v2446_v44  ;;  %v3195_v44 = vunpack.c.l.bf16 %v2449_v45  ;;  %v3200_v45 = vunpack.c.l.bf16 %v2381_v5  ;;  %v1088_v4 = vadd.f32 %v1087_v7, %v1086_v1 }
  0x58   : > { %v2634_v36 = vld [vmem:[%s2365_s8 + $0x190] sm:$0xff]   ;;  %v2653_v15 = vld [vmem:[%s2365_s8 + $0x198] sm:$0xff]   ;;  %v2660_v10 = vld [vmem:[%s2365_s8 + $0x1a0] sm:$0xff]   ;;  %v1122_v2 = vsel %vm1038_vm1, %v3196_v34, 0.0  ;;  %v3201_v13 = vunpack.c.h.bf16 %v2416_v26  ;;  %vm2158_vm10 = vmmov (!%p1608_p10), 0  }
  0x59   : > { %3183 = vst [vmem:[#allocation9_spill] sm:$0xff] %v2653_v15  ;;  %v2666_v30 = vld [vmem:[%s2365_s8 + $0x1a8] sm:$0xff]   ;;  %v2683_v55 = vld [vmem:[%s2365_s8 + $0x1b0] sm:$0xff]   ;;  %v2688_v39 = vld [vmem:[%s2365_s8 + $0x1b8] sm:$0xff]   ;;  %v1118_v31 = vsel %vm1038_vm1, %v3192_v16, 0.0  ;;  %v1052_v15 = vsel %vm1038_vm1, %v3193_v11, 0.0 }
  0x5a   : > { %3186 = vst [vmem:[#allocation10_spill] sm:$0xff] %v2666_v30  ;;  %3191 = vst [vmem:[#allocation11_spill] sm:$0xff] %v2683_v55  ;;  %v1120_v16 = vsel %vm1038_vm1, %v3195_v44, 0.0  ;;  %v1119_v11 = vadd.f32 %v1118_v31, %v1117_v20  ;;  %v2711_v21 = vld [vmem:[%s2365_s8 + $0x1c0] sm:$0xff]   ;;  %v1053_v3 = vadd.f32 %v1052_v15, %v1051_v59  ;;  %v1151_v44 = vsel %vm1038_vm1, %v3198_v12, 0.0  ;;  %v2723_v20 = vld [vmem:[%s2365_s8 + $0x1c8] sm:$0xff]  }
  0x5b   : > { %v1153_v31 = vsel %vm1038_vm1, %v3199_v61, 0.0  ;;  %v1054_v34 = vsel %vm1038_vm1, %v3200_v45, 0.0  ;;  %v1152_v59 = vadd.f32 %v1151_v44, %v1150_v42  ;;  %v1089_v63 = vsel %vm1038_vm1, %v3201_v13, 0.0  ;;  %v2741_v7 = vld [vmem:[%s2365_s8 + $0x1d0] sm:$0xff]   ;;  %vm3053_vm9 = vmpackc.low (!%p1608_p10), %vm1038_vm1, %vm1038_vm1 }
  0x5c   : > { %v1121_v15 = vadd.f32 %v1120_v16, %v1119_v11  ;;  %v3202_v12 = vunpack.c.l.bf16 %v2456_v50  ;;  %v3203_v61 = vunpack.c.h.bf16 %v2486_v48  ;;  %v1858_v30 = vunpack.c.l.bf16 %v2711_v21 }
  0x5d   : > { %v1154_v11 = vadd.f32 %v1153_v31, %v1152_v59  ;;  %v1862_v26 = vunpack.c.l.bf16 %v2723_v20  ;;  %v1055_v42 = vadd.f32 %v1054_v34, %v1053_v3  ;;  %v3204_v44 = vunpack.c.h.bf16 %v2456_v50 }
  0x5e   : > { %v1124_v35 = vsel %vm1038_vm1, %v3202_v12, 0.0  ;;  %v1155_v55 = vsel %vm1038_vm1, %v3203_v61, 0.0  ;;  %v1123_v16 = vadd.f32 %v1122_v2, %v1121_v15  ;;  %v3205_v48 = vunpack.c.l.bf16 %v2489_v47 }
  0x5f   : > { %v1126_v45 = vsel %vm1038_vm1, %v3204_v44, 0.0  ;;  %v3206_v12 = vunpack.c.h.bf16 %v2381_v5  ;;  %v1090_v22 = vadd.f32 %v1089_v63, %v1088_v4  ;;  %v1156_v2 = vadd.f32 %v1155_v55, %v1154_v11  ;;  %v2766_v4 = vld [vmem:[%s2365_s8 + $0x1d8] sm:$0xff]  }
  0x60   : > { %v1157_v13 = vsel %vm1038_vm1, %v3205_v48, 0.0  ;;  %v1125_v1 = vadd.f32 %v1124_v35, %v1123_v16  ;;  %v1863_v31 = vunpack.c.h.bf16 %v2723_v20  ;;  %v3207_v3 = vunpack.c.l.bf16 %v2419_v27 }
  0x61   : > { %v1056_v61 = vsel %vm1038_vm1, %v3206_v12, 0.0  ;;  %v3208_v34 = vunpack.c.h.bf16 %v2489_v47  ;;  %v3209_v48 = vunpack.c.l.bf16 %v2459_v51  ;;  %v1158_v55 = vadd.f32 %v1157_v13, %v1156_v2 }
  0x62   : > { %v1091_v50 = vsel %vm1038_vm1, %v3207_v3, 0.0  ;;  %v1127_v5 = vadd.f32 %v1126_v45, %v1125_v1  ;;  %v1057_v63 = vadd.f32 %v1056_v61, %v1055_v42  ;;  %v3210_v16 = vunpack.c.l.bf16 %v2496_v24 }
  0x63   : > { %v1159_v59 = vsel %vm1038_vm1, %v3208_v34, 0.0  ;;  %v1128_v35 = vsel %vm1038_vm1, %v3209_v48, 0.0  ;;  %v3211_v12 = vunpack.c.l.bf16 %v2519_v19  ;;  %v3212_v3 = vunpack.c.h.bf16 %v2519_v19 }
  0x64   : > { %v1161_v11 = vsel %vm1038_vm1, %v3210_v16, 0.0  ;;  %v3213_v45 = vunpack.c.l.bf16 %v2386_v8  ;;  %v1092_v13 = vadd.f32 %v1091_v50, %v1090_v22  ;;  %v1160_v2 = vadd.f32 %v1159_v59, %v1158_v55 }
  0x65   : > { %v1187_v47 = vsel %vm1038_vm1, %v3211_v12, 0.0  ;;  %v1188_v1 = vsel %vm1038_vm1, %v3212_v3, 0.0  ;;  %v3214_v42 = vunpack.c.l.bf16 %v2526_v25  ;;  %v3215_v48 = vunpack.c.h.bf16 %v2419_v27 }
  0x66   : > { %v1058_v34 = vsel %vm1038_vm1, %v3213_v45, 0.0  ;;  %v1129_v44 = vadd.f32 %v1128_v35, %v1127_v5  ;;  %v3216_v12 = vunpack.c.h.bf16 %v2496_v24  ;;  %v1189_v3 = vadd.f32 %v1188_v1, %v1187_v47 }
  0x67   : > { %v1190_v61 = vsel %vm1038_vm1, %v3214_v42, 0.0  ;;  %v1093_v16 = vsel %vm1038_vm1, %v3215_v48, 0.0  ;;  %v1870_v15 = vunpack.c.l.bf16 %v2766_v4  ;;  %v3217_v45 = vunpack.c.h.bf16 %v2459_v51 }
  0x68   : > { %v1163_v19 = vsel %vm1038_vm1, %v3216_v12, 0.0  ;;  %v1162_v50 = vadd.f32 %v1161_v11, %v1160_v2  ;;  %v3218_v59 = vunpack.c.h.bf16 %v2526_v25  ;;  %v1871_v27 = vunpack.c.h.bf16 %v2766_v4 }
  0x69   : > { %v1130_v22 = vsel %vm1038_vm1, %v3217_v45, 0.0  ;;  %v1059_v42 = vadd.f32 %v1058_v34, %v1057_v63  ;;  %v3219_v5 = vunpack.c.h.bf16 %v2386_v8  ;;  %v1191_v35 = vadd.f32 %v1190_v61, %v1189_v3 }
  0x6a   : > { %v1192_v55 = vsel %vm1038_vm1, %v3218_v59, 0.0  ;;  %v1094_v47 = vadd.f32 %v1093_v16, %v1092_v13  ;;  %v1164_v1 = vadd.f32 %v1163_v19, %v1162_v50  ;;  %v3220_v48 = vunpack.c.l.bf16 %v2499_v23 }
  0x6b   : > { %v1060_v24 = vsel %vm1038_vm1, %v3219_v5, 0.0  ;;  %v3221_v11 = vunpack.c.l.bf16 %v2529_v46  ;;  %v3222_v2 = vunpack.c.l.bf16 %v2389_v9  ;;  %v3223_v63 = vunpack.c.l.bf16 %v2426_v32 }
  0x6c   : > { %v1165_v51 = vsel %vm1038_vm1, %v3220_v48, 0.0  ;;  %v1131_v34 = vadd.f32 %v1130_v22, %v1129_v44  ;;  %v1193_v61 = vadd.f32 %v1192_v55, %v1191_v35  ;;  %v3224_v13 = vunpack.c.h.bf16 %v2389_v9 }
  0x6d   : > { %v1194_v25 = vsel %vm1038_vm1, %v3221_v11, 0.0  ;;  %v1062_v12 = vsel %vm1038_vm1, %v3222_v2, 0.0  ;;  %v1095_v8 = vsel %vm1038_vm1, %v3223_v63, 0.0  ;;  %v3225_v19 = vunpack.c.l.bf16 %v2396_v14 }
  0x6e   : > { %v1064_v16 = vsel %vm1038_vm1, %v3224_v13, 0.0  ;;  %v3226_v45 = vunpack.c.l.bf16 %v2466_v56  ;;  %v3227_v59 = vunpack.c.h.bf16 %v2529_v46  ;;  %v3228_v48 = vunpack.c.h.bf16 %v2396_v14 }
  0x6f   : > { %v1066_v3 = vsel %vm1038_vm1, %v3225_v19, 0.0  ;;  %v3229_v9 = vunpack.c.h.bf16 %v2426_v32  ;;  %v1166_v55 = vadd.f32 %v1165_v51, %v1164_v1  ;;  %v1195_v35 = vadd.f32 %v1194_v25, %v1193_v61 }
  0x70   : > { %v1132_v50 = vsel %vm1038_vm1, %v3226_v45, 0.0  ;;  %v1196_v5 = vsel %vm1038_vm1, %v3227_v59, 0.0  ;;  %v2827_v44 = vsel %vm1038_vm1, %v3228_v48, 0.0  ;;  %v1061_v11 = vadd.f32 %v1060_v24, %v1059_v42 }
  0x71   : > { %v1097_v22 = vsel %vm1038_vm1, %v3229_v9, 0.0  ;;  %v1096_v2 = vadd.f32 %v1095_v8, %v1094_v47  ;;  %v3230_v63 = vunpack.c.h.bf16 %v2499_v23  ;;  %v3231_v46 = vunpack.c.l.bf16 %v2536_v0 }
  0x72   : > { %v1133_v14 = vadd.f32 %v1132_v50, %v1131_v34  ;;  %v1197_v45 = vadd.f32 %v1196_v5, %v1195_v35  ;;  %v3232_v59 = vunpack.c.l.bf16 %v2559_v41  ;;  %v3233_v48 = vunpack.c.h.bf16 %v2559_v41 }
  0x73   : > { %v1167_v13 = vsel %vm1038_vm1, %v3230_v63, 0.0  ;;  %v1198_v19 = vsel %vm1038_vm1, %v3231_v46, 0.0  ;;  %v3234_v42 = vunpack.c.l.bf16 %v2429_v33  ;;  %v3235_v24 = vunpack.c.h.bf16 %v2429_v33 }
  0x74   : > { %v1224_v32 = vsel %vm1038_vm1, %v3232_v59, 0.0  ;;  %v1225_v1 = vsel %vm1038_vm1, %v3233_v48, 0.0  ;;  %v3236_v51 = vunpack.c.h.bf16 %v2466_v56  ;;  %v3237_v8 = vunpack.c.h.bf16 %v2536_v0 }
  0x75   : > { %v1099_v23 = vsel %vm1038_vm1, %v3234_v42, 0.0  ;;  %v1101_v47 = vsel %vm1038_vm1, %v3235_v24, 0.0  ;;  %v1168_v61 = vadd.f32 %v1167_v13, %v1166_v55  ;;  %v1199_v41 = vadd.f32 %v1198_v19, %v1197_v45 }
  0x76   : > { %v1134_v25 = vsel %vm1038_vm1, %v3236_v51, 0.0  ;;  %v1200_v34 = vsel %vm1038_vm1, %v3237_v8, 0.0  ;;  %v1226_v50 = vadd.f32 %v1225_v1, %v1224_v32  ;;  %v3238_v5 = vunpack.c.l.bf16 %v2566_v53 }
  0x77   : > { %v1063_v35 = vadd.f32 %v1062_v12, %v1061_v11  ;;  %v3239_v33 = vunpack.c.l.bf16 %v2506_v28  ;;  %v3240_v56 = vunpack.c.l.bf16 %v2539_v29  ;;  %v3241_v0 = vunpack.c.h.bf16 %v2566_v53 }
  0x78   : > { %v1227_v9 = vsel %vm1038_vm1, %v3238_v5, 0.0  ;;  %v1098_v55 = vadd.f32 %v1097_v22, %v1096_v2  ;;  %v1135_v13 = vadd.f32 %v1134_v25, %v1133_v14  ;;  %v1201_v19 = vadd.f32 %v1200_v34, %v1199_v41 }
  0x79   : > { %v1169_v63 = vsel %vm1038_vm1, %v3239_v33, 0.0  ;;  %v1202_v46 = vsel %vm1038_vm1, %v3240_v56, 0.0  ;;  %v1229_v59 = vsel %vm1038_vm1, %v3241_v0, 0.0  ;;  %v1228_v45 = vadd.f32 %v1227_v9, %v1226_v50 }
  0x7a   : > { %v3242_v32 = vunpack.c.l.bf16 %v2436_v38  ;;  %v3243_v11 = vunpack.c.l.bf16 %v2469_v57  ;;  %v3244_v1 = vunpack.c.h.bf16 %v2539_v29  ;;  %v3245_v53 = vunpack.c.l.bf16 %v2573_v54 }
  0x7b   : > { %v3246_v22 = vunpack.c.h.bf16 %v2436_v38  ;;  %v1170_v14 = vadd.f32 %v1169_v63, %v1168_v61  ;;  %v1203_v51 = vadd.f32 %v1202_v46, %v1201_v19  ;;  %v1230_v25 = vadd.f32 %v1229_v59, %v1228_v45 }
  0x7c   : > { %v1103_v12 = vsel %vm1038_vm1, %v3242_v32, 0.0  ;;  %v1136_v48 = vsel %vm1038_vm1, %v3243_v11, 0.0  ;;  %v1204_v42 = vsel %vm1038_vm1, %v3244_v1, 0.0  ;;  %v1231_v24 = vsel %vm1038_vm1, %v3245_v53, 0.0 }
  0x7d   : > { %v1105_v2 = vsel %vm1038_vm1, %v3246_v22, 0.0  ;;  %v1065_v8 = vadd.f32 %v1064_v16, %v1063_v35  ;;  %v3247_v34 = vunpack.c.h.bf16 %v2506_v28  ;;  %v3248_v29 = vunpack.c.l.bf16 %v2546_v60 }
  0x7e   : > { %v3249_v5 = vunpack.c.h.bf16 %v2573_v54  ;;  %v1100_v33 = vadd.f32 %v1099_v23, %v1098_v55  ;;  %v1137_v38 = vadd.f32 %v1136_v48, %v1135_v13  ;;  %v1205_v56 = vadd.f32 %v1204_v42, %v1203_v51 }
  0x7f   : > { %v1171_v41 = vsel %vm1038_vm1, %v3247_v34, 0.0  ;;  %v1206_v50 = vsel %vm1038_vm1, %v3248_v29, 0.0  ;;  %v1232_v0 = vadd.f32 %v1231_v24, %v1230_v25  ;;  %v3250_v61 = vunpack.c.h.bf16 %v2469_v57 }
  0x80   : > { %v1233_v9 = vsel %vm1038_vm1, %v3249_v5, 0.0  ;;  %v3251_v28 = vunpack.c.l.bf16 %v2476_v62  ;;  %v3252_v63 = vunpack.c.h.bf16 %v2476_v62  ;;  %v3253_v54 = vunpack.c.l.bf16 %v2580_v37 }
  0x81   : > { %v1138_v16 = vsel %vm1038_vm1, %v3250_v61, 0.0  ;;  %v1172_v23 = vadd.f32 %v1171_v41, %v1170_v14  ;;  %v1207_v55 = vadd.f32 %v1206_v50, %v1205_v56  ;;  %v3254_v13 = vunpack.c.h.bf16 %v2546_v60 }
  0x82   : > { %v1140_v35 = vsel %vm1038_vm1, %v3251_v28, 0.0  ;;  %v1142_v46 = vsel %vm1038_vm1, %v3252_v63, 0.0  ;;  %v1235_v59 = vsel %vm1038_vm1, %v3253_v54, 0.0  ;;  %v1234_v19 = vadd.f32 %v1233_v9, %v1232_v0 }
  0x83   : > { %v1208_v57 = vsel %vm1038_vm1, %v3254_v13, 0.0  ;;  %v1067_v45 = vadd.f32 %v1066_v3, %v1065_v8  ;;  %v3255_v32 = vunpack.c.l.bf16 %v2509_v52  ;;  %v3256_v62 = vunpack.c.h.bf16 %v2509_v52 }
  0x84   : > { %v3257_v1 = vunpack.c.h.bf16 %v2580_v37  ;;  %v1102_v53 = vadd.f32 %v1101_v47, %v1100_v33  ;;  %v1139_v24 = vadd.f32 %v1138_v16, %v1137_v38  ;;  %v3258_v60 = vunpack.c.l.bf16 %v2549_v49 }
  0x85   : > { %v1173_v11 = vsel %vm1038_vm1, %v3255_v32, 0.0  ;;  %v1175_v48 = vsel %vm1038_vm1, %v3256_v62, 0.0  ;;  %v1236_v14 = vadd.f32 %v1235_v59, %v1234_v19  ;;  %v1209_v3 = vadd.f32 %v1208_v57, %v1207_v55 }
  0x86   : > { %v1237_v42 = vsel %vm1038_vm1, %v3257_v1, 0.0  ;;  %v1210_v22 = vsel %vm1038_vm1, %v3258_v60, 0.0  ;;  %v3259_v51 = vunpack.c.l.bf16 %v2583_v40  ;;  %v3260_v52 = vunpack.c.l.bf16 %v2618_v6 }
  0x87   : > { %v3261_v37 = vunpack.c.h.bf16 %v2618_v6  ;;  %v1174_v47 = vadd.f32 %v1173_v11, %v1172_v23  ;;  %v1238_v41 = vadd.f32 %v1237_v42, %v1236_v14  ;;  %v3262_v50 = vunpack.c.l.bf16 %v2631_v18 }
  0x88   : > { %v1239_v25 = vsel %vm1038_vm1, %v3259_v51, 0.0  ;;  %v1261_v8 = vsel %vm1038_vm1, %v3260_v52, 0.0  ;;  %v1069_v9 = vadd.f32 %v2827_v44, %v1067_v45  ;;  %v3263_v33 = vunpack.c.l.bf16 %v2516_v43  ;;  %v3274_v51 = vld [vmem:[#allocation7_spill] sm:$0xff] }
  0x89   : > { %v1262_v34 = vsel %vm1038_vm1, %v3261_v37, 0.0  ;;  %v1264_v5 = vsel %vm1038_vm1, %v3262_v50, 0.0  ;;  %v3264_v56 = vunpack.c.h.bf16 %v2583_v40  ;;  %v3265_v6 = vunpack.c.h.bf16 %v2631_v18 }
  0x8a   : > { %v1263_v29 = vadd.f32 %v1262_v34, %v1261_v8  ;;  %v1177_v38 = vsel %vm1038_vm1, %v3263_v33, 0.0  ;;  %v1104_v16 = vadd.f32 %v1103_v12, %v1102_v53  ;;  %v3266_v28 = vunpack.c.h.bf16 %v2516_v43 }
  0x8b   : > { %v1241_v0 = vsel %vm1038_vm1, %v3264_v56, 0.0  ;;  %v1266_v61 = vsel %vm1038_vm1, %v3265_v6, 0.0  ;;  %v1240_v54 = vadd.f32 %v1239_v25, %v1238_v41  ;;  %v1141_v44 = vadd.f32 %v1140_v35, %v1139_v24 }
  0x8c   : > { %v1179_v63 = vsel %vm1038_vm1, %v3266_v28, 0.0  ;;  %v1265_v59 = vadd.f32 %v1264_v5, %v1263_v29  ;;  %v1211_v23 = vadd.f32 %v1210_v22, %v1209_v3  ;;  %v3267_v55 = vunpack.c.l.bf16 %v2587_v58 }
  0x8d   : > { %v3268_v40 = vunpack.c.l.bf16 %v2634_v36  ;;  %v1176_v18 = vadd.f32 %v1175_v48, %v1174_v47  ;;  %v3269_v19 = vunpack.c.h.bf16 %v2549_v49  ;;  %v1242_v43 = vadd.f32 %v1241_v0, %v1240_v54 }
  0x8e   : > { %v1243_v13 = vsel %vm1038_vm1, %v3267_v55, 0.0  ;;  %v1267_v45 = vadd.f32 %v1266_v61, %v1265_v59  ;;  %v1070_v32 = vrot.slane %v1069_v9, 4  ;;  %v3270_v11 = vunpack.c.l.bf16 %v2556_v17  ;;  %v3281_v61 = vld [vmem:[#allocation8_spill] sm:$0xff] }
  0x8f   : > { %v1268_v57 = vsel %vm1038_vm1, %v3268_v40, 0.0  ;;  %v1212_v12 = vsel %vm1038_vm1, %v3269_v19, 0.0  ;;  %v3271_v62 = vunpack.c.h.bf16 %v2587_v58  ;;  %v3272_v42 = vunpack.c.h.bf16 %v2634_v36  ;;  %v3276_v58 = vld [vmem:[#allocation9_spill] sm:$0xff] }
  0x90   : > { %v1214_v35 = vsel %vm1038_vm1, %v3270_v11, 0.0  ;;  %v1106_v48 = vadd.f32 %v1105_v2, %v1104_v16  ;;  %v3273_v49 = vunpack.c.h.bf16 %v2556_v17  ;;  %v1244_v60 = vadd.f32 %v1243_v13, %v1242_v43  ;;  %v1947_v13 = vld [vmem:[%s2365_s8 + $0x1e0] sm:$0xff]  }
  0x91   : > { %v1245_v1 = vsel %vm1038_vm1, %v3271_v62, 0.0  ;;  %v1270_v53 = vsel %vm1038_vm1, %v3272_v42, 0.0  ;;  %v1269_v22 = vadd.f32 %v1268_v57, %v1267_v45  ;;  %v1143_v14 = vadd.f32 %v1142_v46, %v1141_v44 }
  0x92   : > { %v1216_v24 = vsel %vm1038_vm1, %v3273_v49, 0.0  ;;  %v1213_v3 = vadd.f32 %v1212_v12, %v1211_v23  ;;  %v3275_v25 = vunpack.c.l.bf16 %v3274_v51  ;;  %v3277_v8 = vunpack.c.l.bf16 %v3276_v58 }
  0x93   : > { %v1178_v36 = vadd.f32 %v1177_v38, %v1176_v18  ;;  %v1246_v34 = vadd.f32 %v1245_v1, %v1244_v60  ;;  %v1271_v47 = vadd.f32 %v1270_v53, %v1269_v22  ;;  %v1298_v17 = vsel %vm1038_vm1, %v1858_v30, 0.0  ;;  %v1948_v22 = vld [vmem:[%s2365_s8 + $0x1e8] sm:$0xff]  }
  0x94   : > { %v1247_v52 = vsel %vm1038_vm1, %v3275_v25, 0.0  ;;  %v1272_v37 = vsel %vm1038_vm1, %v3277_v8, 0.0  ;;  %v3278_v2 = vunpack.c.h.bf16 %v3274_v51  ;;  %v3279_v41 = vunpack.c.h.bf16 %v3276_v58 }
  0x95   : > { %v3280_v50 = vunpack.c.h.bf16 %v2711_v21  ;;  %v1301_v33 = vsel %vm1038_vm1, %v1862_v26, 0.0  ;;  %v1107_v38 = vrot.slane %v1106_v48, 4  ;;  %v1248_v56 = vadd.f32 %v1247_v52, %v1246_v34 }
  0x96   : > { %v1249_v46 = vsel %vm1038_vm1, %v3278_v2, 0.0  ;;  %v1274_v29 = vsel %vm1038_vm1, %v3279_v41, 0.0  ;;  %v1273_v30 = vadd.f32 %v1272_v37, %v1271_v47  ;;  %v1215_v6 = vadd.f32 %v1214_v35, %v1213_v3  ;;  %v3291_v47 = vld [vmem:[#allocation11_spill] sm:$0xff] }
  0x97   : > { %v1299_v5 = vsel %vm1038_vm1, %v3280_v50, 0.0  ;;  %v3282_v16 = vunpack.c.l.bf16 %v3281_v61  ;;  %v3283_v54 = vunpack.c.l.bf16 %v2660_v10  ;;  %v1303_v21 = vsel %vm1038_vm1, %v1863_v31, 0.0 }
  0x98   : > { %v1300_v0 = vadd.f32 %v1299_v5, %v1298_v17  ;;  %v1180_v44 = vadd.f32 %v1179_v63, %v1178_v36  ;;  %v1250_v23 = vadd.f32 %v1249_v46, %v1248_v56  ;;  %v1275_v26 = vadd.f32 %v1274_v29, %v1273_v30  ;;  %v1949_v5 = vld [vmem:[%s2365_s8 + $0x1f0] sm:$0xff]  }
  0x99   : > { %v1251_v28 = vsel %vm1038_vm1, %v3282_v16, 0.0  ;;  %v1276_v59 = vsel %vm1038_vm1, %v3283_v54, 0.0  ;;  %v1071_v40 = vadd.f32 %v1070_v32, %v1069_v9  ;;  %v1144_v57 = vrot.slane %v1143_v14, 4  ;;  %v3287_v9 = vld [vmem:[#allocation10_spill] sm:$0xff] }
  0x9a   : > { %v1302_v55 = vadd.f32 %v1301_v33, %v1300_v0  ;;  %v3284_v18 = vunpack.c.h.bf16 %v2660_v10  ;;  %v3285_v12 = vunpack.c.l.bf16 %v2741_v7  ;;  %v1108_v45 = vadd.f32 %v1107_v38, %v1106_v48 }
  0x9b   : > { %v1252_v20 = vadd.f32 %v1251_v28, %v1250_v23  ;;  %v1277_v11 = vadd.f32 %v1276_v59, %v1275_v26  ;;  %v1217_v63 = vadd.f32 %v1216_v24, %v1215_v6  ;;  %v3286_v35 = vunpack.c.h.bf16 %v3281_v61 }
  0x9c   : > { %v1278_v19 = vsel %vm1038_vm1, %v3284_v18, 0.0  ;;  %v1305_v43 = vsel %vm1038_vm1, %v3285_v12, 0.0  ;;  %v1304_v31 = vadd.f32 %v1303_v21, %v1302_v55  ;;  %v3288_v32 = vunpack.c.l.bf16 %v3287_v9 }
  0x9d   : > { %v1253_v62 = vsel %vm1038_vm1, %v3286_v35, 0.0  ;;  %v3289_v10 = vunpack.c.h.bf16 %v2741_v7  ;;  %v1874_v53 = vunpack.c.l.bf16 %v1947_v13  ;;  %v1181_v49 = vrot.slane %v1180_v44, 4 }
  0x9e   : > { %v1280_v1 = vsel %vm1038_vm1, %v3288_v32, 0.0  ;;  %v1279_v60 = vadd.f32 %v1278_v19, %v1277_v11  ;;  %v1306_v48 = vadd.f32 %v1305_v43, %v1304_v31  ;;  %v1072_v3 = vrot.slane %v1071_v40, 2  ;;  %v1950_v19 = vld [vmem:[%s2365_s8 + $0x1f8] sm:$0xff]  }
  0x9f   : > { %v1307_v42 = vsel %vm1038_vm1, %v3289_v10, 0.0  ;;  %v1145_v24 = vadd.f32 %v1144_v57, %v1143_v14  ;;  %v3290_v51 = vunpack.c.h.bf16 %v3287_v9  ;;  %v1309_v52 = vsel %vm1038_vm1, %v1870_v15, 0.0 }
  0xa0   : > { %v1109_v58 = vrot.slane %v1108_v45, 2  ;;  %v1254_v7 = vadd.f32 %v1253_v62, %v1252_v20  ;;  %v1281_v8 = vadd.f32 %v1280_v1, %v1279_v60  ;;  %v1308_v37 = vadd.f32 %v1307_v42, %v1306_v48 }
  0xa1   : > { %v1282_v25 = vsel %vm1038_vm1, %v3290_v51, 0.0  ;;  %v1875_v36 = vunpack.c.h.bf16 %v1947_v13  ;;  %v1218_v34 = vrot.slane %v1217_v63, 4  ;;  %v3292_v17 = vunpack.c.l.bf16 %v3291_v47 }
  0xa2   : > { %v1311_v14 = vsel %vm1038_vm1, %v1871_v27, 0.0  ;;  %v1878_v46 = vunpack.c.l.bf16 %v1948_v22  ;;  %v1182_v41 = vadd.f32 %v1181_v49, %v1180_v44  ;;  %v1283_v29 = vadd.f32 %v1282_v25, %v1281_v8 }
  0xa3   : > { %v1284_v2 = vsel %vm1038_vm1, %v3292_v17, 0.0  ;;  %v1310_v50 = vadd.f32 %v1309_v52, %v1308_v37  ;;  %v1073_v15 = vadd.f32 %v1072_v3, %v1071_v40  ;;  %v1146_v33 = vrot.slane %v1145_v24, 2 }
  0xa4   : > { %v3293_v38 = vunpack.c.h.bf16 %v3291_v47  ;;  %v1313_v30 = vsel %vm1038_vm1, %v1874_v53, 0.0  ;;  %v1110_v0 = vadd.f32 %v1109_v58, %v1108_v45  ;;  %v1255_v6 = vrot.slane %v1254_v7, 4 }
  0xa5   : > { %v1285_v61 = vadd.f32 %v1284_v2, %v1283_v29  ;;  %v1312_v4 = vadd.f32 %v1311_v14, %v1310_v50  ;;  %v1879_v16 = vunpack.c.h.bf16 %v1948_v22  ;;  %v1219_v27 = vadd.f32 %v1218_v34, %v1217_v63 }
  0xa6   : > { %v1286_v56 = vsel %vm1038_vm1, %v3293_v38, 0.0  ;;  %v3294_v28 = vunpack.c.l.bf16 %v2688_v39  ;;  %v1315_v59 = vsel %vm1038_vm1, %v1875_v36, 0.0  ;;  %v1882_v21 = vunpack.c.l.bf16 %v1949_v5 }
  0xa7   : > { %v1183_v44 = vrot.slane %v1182_v41, 2  ;;  %v1287_v23 = vadd.f32 %v1286_v56, %v1285_v61  ;;  %v1314_v26 = vadd.f32 %v1313_v30, %v1312_v4  ;;  %v1074_v55 = vrot.slane %v1073_v15, 1 }
  0xa8   : > { %v1288_v54 = vsel %vm1038_vm1, %v3294_v28, 0.0  ;;  %v1147_v13 = vadd.f32 %v1146_v33, %v1145_v24  ;;  %v3295_v40 = vunpack.c.h.bf16 %v2688_v39  ;;  %v1317_v18 = vsel %vm1038_vm1, %v1878_v46, 0.0  ;;  %v781_v28 = vld [vmem:[#allocation2] sm:$0xff] }
  0xa9   : > { %v1111_v12 = vrot.slane %v1110_v0, 1  ;;  %v1256_v43 = vadd.f32 %v1255_v6, %v1254_v7  ;;  %v1289_v45 = vadd.f32 %v1288_v54, %v1287_v23  ;;  %v1316_v20 = vadd.f32 %v1315_v59, %v1314_v26  ;;  %v1366_v23 = vld [vmem:[%s3166_s1 + $0x8] sm:$0xff] (!%p1608_p10) }
  0xaa   : > { %v1290_v57 = vsel %vm1038_vm1, %v3295_v40, 0.0  ;;  %v1883_v11 = vunpack.c.h.bf16 %v1949_v5  ;;  %v1220_v31 = vrot.slane %v1219_v27, 2  ;;  %v1319_v63 = vsel %vm1038_vm1, %v1879_v16, 0.0 }
  0xab   : > { %v1184_v35 = vadd.f32 %v1183_v44, %v1182_v41  ;;  %v1291_v62 = vadd.f32 %v1290_v57, %v1289_v45  ;;  %v1318_v9 = vadd.f32 %v1317_v18, %v1316_v20  ;;  %v1886_v32 = vunpack.c.l.bf16 %v1950_v19  ;;  %v1365_v44 = vld [vmem:[%s3166_s1] sm:$0xff] (!%p1608_p10)  ;;  %v1367_v57 = vld [vmem:[%s3166_s1 + $0x10] sm:$0xff] (!%p1608_p10)  ;;  %v1368_v18 = vld [vmem:[%s3166_s1 + $0x18] sm:$0xff] (!%p1608_p10) }
  0xac   : > { %v1075_v1 = vadd.f32 %v1074_v55, %v1073_v15  ;;  %v1148_v10 = vrot.slane %v1147_v13, 1  ;;  %v1321_v39 = vsel %vm1038_vm1, %v1882_v21, 0.0  ;;  %v1112_v42 = vadd.f32 %v1111_v12, %v1110_v0  ;;  %v1369_v12 = vld [vmem:[%s3166_s1 + $0x20] sm:$0xff] (!%p1608_p10)  ;;  %v1371_v20 = vld [vmem:[%s3166_s1 + $0x30] sm:$0xff] (!%p1608_p10) }
  0xad   : > { %v1257_v53 = vrot.slane %v1256_v43, 2  ;;  %v1292_v49 = vrot.slane %v1291_v62, 4  ;;  %v1320_v60 = vadd.f32 %v1319_v63, %v1318_v9  ;;  %v1887_v48 = vunpack.c.h.bf16 %v1950_v19  ;;  %v1373_v63 = vld [vmem:[%s3166_s1 + $0x40] sm:$0xff] (!%p1608_p10)  ;;  %v1375_v9 = vld [vmem:[%s3166_s1 + $0x50] sm:$0xff] (!%p1608_p10) }
  0xae   : > { %v1221_v22 = vadd.f32 %v1220_v31, %v1219_v27  ;;  %v1323_v3 = vsel %vm1038_vm1, %v1883_v11, 0.0  ;;  %v1185_v24 = vrot.slane %v1184_v35, 1  ;;  %v1149_v52 = vadd.f32 %v1148_v10, %v1147_v13  ;;  %v1372_v11 = vld [vmem:[%s3166_s1 + $0x38] sm:$0xff] (!%p1608_p10)  ;;  %v1377_v10 = vld [vmem:[%s3166_s1 + $0x60] sm:$0xff] (!%p1608_p10) }
  0xaf   : > { %v1293_v51 = vadd.f32 %v1292_v49, %v1291_v62  ;;  %v1322_v25 = vadd.f32 %v1321_v39, %v1320_v60  ;;  %v1325_v58 = vsel %vm1038_vm1, %v1886_v32, 0.0  ;;  %v1258_v7 = vadd.f32 %v1257_v53, %v1256_v43  ;;  %v1370_v43 = vld [vmem:[%s3166_s1 + $0x28] sm:$0xff] (!%p1608_p10)  ;;  %v1376_v32 = vld [vmem:[%s3166_s1 + $0x58] sm:$0xff] (!%p1608_p10)  ;;  %v1379_v53 = vld [vmem:[%s3166_s1 + $0x70] sm:$0xff] (!%p1608_p10) }
  0xb0   : > { %v1344_v36 = vsel %vm1343_vm2, %v1112_v42, %v1075_v1  ;;  %v1222_v34 = vrot.slane %v1221_v22, 1  ;;  %v1327_v47 = vsel %vm1038_vm1, %v1887_v48, 0.0  ;;  %v1186_v17 = vadd.f32 %v1185_v24, %v1184_v35  ;;  %v1374_v35 = vld [vmem:[%s3166_s1 + $0x48] sm:$0xff] (!%p1608_p10)  ;;  %v1380_v49 = vld [vmem:[%s3166_s1 + $0x78] sm:$0xff] (!%p1608_p10) }
  0xb1   : > { %v1294_v8 = vrot.slane %v1293_v51, 2  ;;  %v1324_v37 = vadd.f32 %v1323_v3, %v1322_v25  ;;  %v1346_v46 = vsel %vm1345_vm3, %v1149_v52, %v1344_v36  ;;  %v1259_v41 = vrot.slane %v1258_v7, 1  ;;  %v1378_v39 = vld [vmem:[%s3166_s1 + $0x68] sm:$0xff] (!%p1608_p10) }
  0xb2   : > { %v1223_v50 = vadd.f32 %v1222_v34, %v1221_v22  ;;  %v1348_v15 = vsel %vm1347_vm4, %v1186_v17, %v1346_v46  ;;  %v2157_v55 = vmov (!%p1608_p10), 0.0|0.0   ;;  %v2004_v13 = vpack.c.bf16 (!%p1608_p10), %v1366_v23, %v1365_v44  ;;  %v1609_v22 = vld [vmem:[%s3167_s2] ss:$0 sm:$0xff] (!%p1608_p10) }
  0xb3   : > { %v1326_v2 = vadd.f32 %v1325_v58, %v1324_v37  ;;  %v1295_v14 = vadd.f32 %v1294_v8, %v1293_v51  ;;  %v1260_v38 = vadd.f32 %v1259_v41, %v1258_v7  ;;  %2003 = vmatprep.subr.bf16.mxu0 (!%p1608_p10), %v2157_v55  ;;  %v2159_v40 = vmov (!%p1608_p10), 0.0   ;;  %v1510_v51 = vld [vmem:[%s3168_s3] sm:$0xff] (!%p1608_p10) }
  0xb4   : > { %v1350_v30 = vsel %vm1349_vm5, %v1223_v50, %v1348_v15  ;;  %2000 = vmatprep.mubr.msk.f32.mxu0 (!%p1608_p10), %vm2158_vm10, %v2159_v40  ;;  %2006 = vmatpush3.bf16.xpose.msk.msra.mxu0 (!%p1608_p10), %vm3053_vm9, %v2004_v13  ;;  %v2008_v19 = vpack.c.bf16 (!%p1608_p10), %v1368_v18, %v1367_v57  ;;  %v2012_v45 = vpack.c.bf16 (!%p1608_p10), %v1370_v43, %v1369_v12  ;;  %vm1511_vm11 = vcmp.ge.s32.totalorder (!%p1608_p10), %v1510_v51, 1677722 }
  0xb5   : > { %v1328_v29 = vadd.f32 %v1327_v47, %v1326_v2  ;;  %v1296_v33 = vrot.slane %v1295_v14, 1  ;;  %v1352_v4 = vsel %vm1351_vm6, %v1260_v38, %v1350_v30  ;;  %2007 = vmatprep.subr.bf16.mxu0 (!%p1608_p10), %v2157_v55  ;;  %v2016_v31 = vpack.c.bf16 (!%p1608_p10), %v1372_v11, %v1371_v20 }
  0xb6   : > { %v2020_v62 = vpack.c.bf16 (!%p1608_p10), %v1374_v35, %v1373_v63  ;;  %v2024_v1 = vpack.c.bf16 (!%p1608_p10), %v1376_v32, %v1375_v9  ;;  %v2028_v42 = vpack.c.bf16 (!%p1608_p10), %v1378_v39, %v1377_v10  ;;  %v2032_v60 = vpack.c.bf16 (!%p1608_p10), %v1380_v49, %v1379_v53 }
  0xb7   : > { %v1329_v5 = vrot.slane %v1328_v29, 4  ;;  %v1297_v6 = vadd.f32 %v1296_v33, %v1295_v14 }
  0xb9   : > { %v1330_v56 = vadd.f32 %v1329_v5, %v1328_v29  ;;  %v1354_v27 = vsel %vm1353_vm7, %v1297_v6, %v1352_v4 }
  0xbb   : > { %v1331_v0 = vrot.slane %v1330_v56, 2 }
  0xbc   : > { %2010 = vmatpush3.bf16.xpose.msk.msra.mxu0 (!%p1608_p10), %vm3053_vm9, %v2008_v19 }
  0xbd   : > { %v1332_v61 = vadd.f32 %v1331_v0, %v1330_v56  ;;  %2011 = vmatprep.subr.bf16.mxu0 (!%p1608_p10), %v2157_v55 }
  0xbf   : > { %v1333_v16 = vrot.slane %v1332_v61, 1 }
  0xc0   : > { %1363 = sbr.rel (%p1608_p10) target bundleno = 463 (0x1cf), region = 85 }
  0xc1   : > { %v1334_v54 = vadd.f32 %v1333_v16, %v1332_v61 }
  0xc3   : > { %v1356_v59 = vsel %vm1355_vm8, %v1334_v54, %v1354_v27 }
  0xc4   : > { %v1358_v21 = vadd.f32 %v1356_v59, %v781_v28  ;;  %2014 = vmatpush3.bf16.xpose.msk.msra.mxu0 (!%p1608_p10), %vm3053_vm9, %v2012_v45 }
  0xc5   : > { %2015 = vmatprep.subr.bf16.mxu0 (!%p1608_p10), %v2157_v55 }
  0xc6   : > { %1359 = vst.msk [vmem:[#allocation2] sm:$0xff] %vm1038_vm1, %v1358_v21 }
  0xcc   : > { %2018 = vmatpush3.bf16.xpose.msk.msra.mxu0 %vm3053_vm9, %v2016_v31 }
  0xcd   : > { %2019 = vmatprep.subr.bf16.mxu0 %v2157_v55  ;;  %v1364_v48 = vld [vmem:[#allocation2] sm:$0xff] }
  0xd4   : > { %2022 = vmatpush3.bf16.xpose.msk.msra.mxu0 %vm3053_vm9, %v2020_v62 }
  0xd5   : > { %2023 = vmatprep.subr.bf16.mxu0 %v2157_v55 }
  0xdc   : > { %2026 = vmatpush3.bf16.xpose.msk.msra.mxu0 %vm3053_vm9, %v2024_v1 }
  0xdd   : > { %2027 = vmatprep.subr.bf16.mxu0 %v2157_v55 }
  0xe4   : > { %2030 = vmatpush3.bf16.xpose.msk.msra.mxu0 %vm3053_vm9, %v2028_v42 }
  0xe5   : > { %2031 = vmatprep.subr.bf16.mxu0 %v2157_v55 }
  0xec   : > { %2034 = vmatpush3.bf16.xpose.msk.msra.mxu0 %vm3053_vm9, %v2032_v60 }
  0xf3   : > { %2001 = vmatmul.mubr.msk.f32.vlgmr.msra.gmra.mrb[0].mxu0 %vm1038_vm1, %v1364_v48 }
 0x1c6   : > { %v1505_v3 = vpop.f32.mrb[0].mxu0 }
 0x1c7   : > { %v1506_v24 = vadd.f32 %v1609_v22, %v1505_v3  ;;  %v2002_v25 = vpop.f32.mrb[1].mxu0 }
 0x1c9   : > { %v1509_v52 = vmax.f32 %v1506_v24, 0.0 }
 0x1cb   : > { %v1512_v58 = vmul.f32 1.1111112, %v1509_v52 }
 0x1cd   : > { %v1513_v7 = vsel %vm1511_vm11, %v1512_v58, 0.0 }
 0x1ce   : > { %1514 = vst [vmem:[#allocation4] sm:$0xff] %v1513_v7 }
 0x1cf PF: > { %p3124_p11 = scmp.eq.s32.totalorder %s1598_s20, 1  ;;  %s2160_s6 = smov [#allocation4]  }
 0x1d0   : > { %s1524_s7 = sshll.u32 %s2160_s6, 4  ;;  %s1525_s7 = int_to_ptr.vmem [resolvable:$true] %s1524_s7 }
 0x1d1   : > { %s2086_s8 = scalar_lea.vmem %s1525_s7, 128  ;;  %p2093_p1 = scmp.lt.s32.totalorder %s1525_s7, %s1525_s7 }
 0x1d2   : > { %p2087_p12 = scmp.ne.s32.totalorder %s1525_s7, %s2086_s8  ;;  %p2094_p2 = scmp.lt.s32.totalorder %s2086_s8, %s2086_s8 }
 0x1d4   : > { %p2088_p13 = pnand %p2087_p12, %p3124_p11  ;;  %p2095_p3 = por %p2094_p2, %p2093_p1 }
 0x1d6   : > { %p2089_p0 = pneg %p2088_p13 }
 0x1d8   : > { %p2096_p4 = pnand %p2095_p3, %p2089_p0 }
 0x1da   : > { %2099 = shalt.err (!%p2096_p4)
}
 0x1db   : > { %s2100_s20 = scalar_lea.hbm %s3169_s4, 128 }
 0x1dc   : > { %p2101_p5 = scmp.ne.s32.totalorder %s3169_s4, %s2100_s20  ;;  %p2106_p8 = scmp.lt.u32.totalorder %s2100_s20, %s3169_s4 }
 0x1de   : > { %p2102_p6 = pnand %p2101_p5, %p3124_p11 }
 0x1e0   : > { %p2103_p7 = pneg %p2102_p6 }
 0x1e2   : > { %p2108_p9 = pnand %p2106_p8, %p2103_p7 }
 0x1e4   : > { %2111 = shalt.err (!%p2108_p9)
}
 0x1e5   : > { %2036 = dma.vmem_to_hbm [thread:$0]  (%p3124_p11), %s1525_s7, 128, %s3169_s4, [#allocation5]  }
 0x1e6   : > { %2133 = dma.done.wait (%p3124_p11), [#allocation5], 128  }
 0x1e7   : > { %2135 = vsyncadd (%p3124_p11), [#allocation5], 4294967168 }
 0x1e8 PF: > { %s15_s19 = sadd.s32 1, %s2154_s19   ;;  %s3299_s15 = smov %s2142_s16 }
 0x1e9   : > { %p12_p10 = scmp.ge.s32.totalorder %s15_s19, 4   ;;  %s3300_s16 = smov %s2222_s24 }
 0x1ea   : > { %s3301_s17 = smov %s2150_s18  ;;  %s3302_s18 = smov %s3304_s21 }
 0x1eb   :  { %14 = sbr.rel (!%p12_p10) target bundleno = 3 (0x3), region = 121 }
 0x1f2   :  { %1537 = vsyncpa [#allocation5], 1 }
 0x1f3   :  { %1539 = vsyncpa [#allocation5 + $0x1], 1 }

</bundles_post_ra>
